<compile_context>
chip_gen: v6e
topology: v6e:2x2x1
jax: 0.10.0
libtpu: 0.0.40
codegen_flags: <defaults>
</compile_context>

<pallas_src>
import functools

import jax
import jax.numpy as jnp
from jax.experimental import pallas as pl
from jax.experimental.pallas import tpu as pltpu


# ---------------------------------------------------------------------------
# Hardware-aware configuration helpers
# ---------------------------------------------------------------------------

def _vmem_budget():
    """(vmem_limit_bytes, per-step group budget) sized from the actual chip."""
    cap = None
    try:
        info = pltpu.get_tpu_info()
        cap = getattr(info, "vmem_capacity_bytes", None)
    except Exception:
        cap = None
    if not cap:
        cap = 64 * 1024 * 1024          # conservative (v7x-sized) fallback
    vmem_limit = int(cap * 0.75)        # ~96 MiB on v5e/v6e, ~48 MiB on v7x
    group_budget = int(vmem_limit * 0.75)   # ~25% headroom for compiler scratch/spills
    return vmem_limit, group_budget


def _use_bf16_exp():
    """bf16 EUP exists from v6e on; keep f32 exp on v5e and older."""
    try:
        kind = jax.devices()[0].device_kind.lower()
    except Exception:
        return False
    return not any(s in kind for s in ("v2", "v3", "v4", "v5"))


def _pick_group(n_units, unit_cost_fn, budget_bytes, min_steps=2):
    """Largest divisor g of n_units fitting the budget, preferring >= min_steps grid steps."""
    divisors = [g for g in range(1, n_units + 1) if n_units % g == 0]
    for g in sorted(divisors, reverse=True):
        if unit_cost_fn(g) <= budget_bytes and (n_units // g) >= min_steps:
            return g
    for g in sorted(divisors, reverse=True):
        if unit_cost_fn(g) <= budget_bytes:
            return g
    return 1


def _normalize_mask(mask, B, H, Lq, Lk):
    """Return (flattened int8 mask, head_shared flag)."""
    m = jnp.asarray(mask)
    while m.ndim < 4:
        m = m[None]
    head_shared = (m.shape[1] == 1)
    if head_shared:
        mflat = jnp.broadcast_to(m, (B, 1, Lq, Lk)).reshape(B, Lq, Lk).astype(jnp.int8)
    else:
        mflat = jnp.broadcast_to(m, (B, H, Lq, Lk)).reshape(B * H, Lq, Lk).astype(jnp.int8)
    return mflat, head_shared


# ---------------------------------------------------------------------------
# One-shot kernels (return attn, module-faithful)
# ---------------------------------------------------------------------------

def _softmax_and_pv(scores, v_ref, out_ref, attn_ref, use_bf16_exp):
    m = jnp.max(scores, axis=-1, keepdims=True)
    centered = scores - m
    if use_bf16_exp:
        e = jnp.exp(centered.astype(jnp.bfloat16))          # bf16 EUP (v6e/v7x)
        denom = jnp.sum(e.astype(jnp.float32), axis=-1, keepdims=True)
    else:
        e = jnp.exp(centered)                                # f32 EUP (v5e)
        denom = jnp.sum(e, axis=-1, keepdims=True)

    # Exact reciprocal: attn is handed back to the caller, rows must sum to ~1.
    attn = e.astype(jnp.float32) * pl.reciprocal(denom)

    # Single cast: the same tensor feeds the MXU and the attn store when dtypes match.
    p = attn.astype(v_ref.dtype)
    out = jax.lax.dot_general(
        p, v_ref[...],
        dimension_numbers=(((2,), (1,)), ((0,), (0,))),
        preferred_element_type=jnp.float32,
    )
    out_ref[...] = out.astype(out_ref.dtype)
    attn_ref[...] = p if attn_ref.dtype == v_ref.dtype else attn.astype(attn_ref.dtype)


def _sdpa_oneshot_kernel(q_ref, k_ref, v_ref, out_ref, attn_ref, *,
                         inv_temp, use_bf16_exp):
    scores = jax.lax.dot_general(
        q_ref[...] * inv_temp, k_ref[...],
        dimension_numbers=(((2,), (2,)), ((0,), (0,))),
        preferred_element_type=jnp.float32,
    )  # (G, Lq, Lk) f32
    _softmax_and_pv(scores, v_ref, out_ref, attn_ref, use_bf16_exp)


def _sdpa_oneshot_masked_kernel(q_ref, k_ref, v_ref, mask_ref, out_ref, attn_ref, *,
                                inv_temp, use_bf16_exp):
    scores = jax.lax.dot_general(
        q_ref[...] * inv_temp, k_ref[...],
        dimension_numbers=(((2,), (2,)), ((0,), (0,))),
        preferred_element_type=jnp.float32,
    )
    scores = jnp.where(mask_ref[...] == 0, jnp.float32(-1e9), scores)
    _softmax_and_pv(scores, v_ref, out_ref, attn_ref, use_bf16_exp)


# ---------------------------------------------------------------------------
# Flash-style kernels (no attn output, Lk-tiled online softmax)
# ---------------------------------------------------------------------------

def _flash_update(s, v_ref, m_sc, l_sc, acc_sc, use_bf16_exp):
    m_prev = m_sc[...]
    m_new = jnp.maximum(m_prev, jnp.max(s, axis=-1, keepdims=True))
    alpha = jnp.exp(m_prev - m_new)                          # (G, Lq, 1) f32
    centered = s - m_new
    if use_bf16_exp:
        p = jnp.exp(centered.astype(jnp.bfloat16))
        p_sum = jnp.sum(p.astype(jnp.float32), axis=-1, keepdims=True)
    else:
        p = jnp.exp(centered)
        p_sum = jnp.sum(p, axis=-1, keepdims=True)
    l_sc[...] = alpha * l_sc[...] + p_sum
    pv = jax.lax.dot_general(
        p.astype(v_ref.dtype), v_ref[...],
        dimension_numbers=(((2,), (1,)), ((0,), (0,))),
        preferred_element_type=jnp.float32,
    )
    acc_sc[...] = alpha * acc_sc[...] + pv
    m_sc[...] = m_new


def _flash_init(m_sc, l_sc, acc_sc):
    m_sc[...] = jnp.full_like(m_sc, -jnp.inf)
    l_sc[...] = jnp.zeros_like(l_sc)
    acc_sc[...] = jnp.zeros_like(acc_sc)


def _flash_finalize(out_ref, l_sc, acc_sc):
    # attn never hits HBM on this path; approx (EUP) reciprocal only scales the output.
    out_ref[...] = (acc_sc[...] * pl.reciprocal(l_sc[...], approx=True)).astype(out_ref.dtype)


def _sdpa_flash_kernel(q_ref, k_ref, v_ref, out_ref, m_sc, l_sc, acc_sc, *,
                       inv_temp, use_bf16_exp):
    t = pl.program_id(2)

    @pl.when(t == 0)
    def _():
        _flash_init(m_sc, l_sc, acc_sc)

    s = jax.lax.dot_general(
        q_ref[...] * inv_temp, k_ref[...],
        dimension_numbers=(((2,), (2,)), ((0,), (0,))),
        preferred_element_type=jnp.float32,
    )  # (G, Lq, tk) f32
    _flash_update(s, v_ref, m_sc, l_sc, acc_sc, use_bf16_exp)

    @pl.when(t == pl.num_programs(2) - 1)
    def _():
        _flash_finalize(out_ref, l_sc, acc_sc)


def _sdpa_flash_masked_kernel(q_ref, k_ref, v_ref, mask_ref, out_ref,
                              m_sc, l_sc, acc_sc, *, inv_temp, use_bf16_exp):
    t = pl.program_id(2)

    @pl.when(t == 0)
    def _():
        _flash_init(m_sc, l_sc, acc_sc)

    s = jax.lax.dot_general(
        q_ref[...] * inv_temp, k_ref[...],
        dimension_numbers=(((2,), (2,)), ((0,), (0,))),
        preferred_element_type=jnp.float32,
    )
    s = jnp.where(mask_ref[...] == 0, jnp.float32(-1e9), s)
    _flash_update(s, v_ref, m_sc, l_sc, acc_sc, use_bf16_exp)

    @pl.when(t == pl.num_programs(2) - 1)
    def _():
        _flash_finalize(out_ref, l_sc, acc_sc)


# ---------------------------------------------------------------------------
# Wrappers
# ---------------------------------------------------------------------------

def _sdpa_oneshot(q, k, v, mask, temperature, use_bf16_exp, vmem_limit, group_budget):
    B, H, Lq, Dk = q.shape
    Lk = k.shape[2]
    Dv = v.shape[3]
    BH = B * H
    in_isz = q.dtype.itemsize
    out_isz = q.dtype.itemsize
    inv_temp = 1.0 / float(temperature)

    qf = q.reshape(BH, Lq, Dk)
    kf = k.reshape(BH, Lk, Dk)
    vf = v.reshape(BH, Lk, Dv)

    mflat, head_shared = (None, False)
    if mask is not None:
        mflat, head_shared = _normalize_mask(mask, B, H, Lq, Lk)

    def unit_cost(g):
        io_in = 2 * g * (Lq * Dk + Lk * Dk + Lk * Dv) * in_isz   # double-buffered inputs
        io_out = 2 * g * (Lq * Dv + Lq * Lk) * out_isz           # double-buffered outputs
        if mask is not None:
            io_in += 2 * (1 if head_shared else g) * Lq * Lk     # int8 mask
        # f32 scores/exp/attn temps + out temp, x1.5 margin for casts/compiler scratch
        work = int(1.5 * g * (3 * Lq * Lk + Lq * Dv) * 4)
        return io_in + io_out + work

    if head_shared:
        # Group within H only so the (1, Lq, Lk) mask block index is constant across
        # the inner axis and never re-DMA'd.
        min_steps = 1 if B >= 2 else 2
        G = _pick_group(H, unit_cost, group_budget, min_steps)
        HG = H // G
        grid = (B, HG)
        dims = ("parallel", "parallel")

        def qkv_map(b, g):
            return (b * HG + g, 0, 0)

        mask_spec = pl.BlockSpec((1, Lq, Lk), lambda b, g: (b, 0, 0))
    else:
        # Group over the flattened B*H axis to keep per-step tiles large even when H
        # has awkward factors.
        G = _pick_group(BH, unit_cost, group_budget, 2)
        grid = (BH // G,)
        dims = ("parallel",)

        def qkv_map(i):
            return (i, 0, 0)

        mask_spec = pl.BlockSpec((G, Lq, Lk), qkv_map) if mask is not None else None

    in_specs = [
        pl.BlockSpec((G, Lq, Dk), qkv_map),
        pl.BlockSpec((G, Lk, Dk), qkv_map),
        pl.BlockSpec((G, Lk, Dv), qkv_map),
    ]
    args = [qf, kf, vf]
    if mask is None:
        kernel = functools.partial(_sdpa_oneshot_kernel,
                                   inv_temp=inv_temp, use_bf16_exp=use_bf16_exp)
    else:
        kernel = functools.partial(_sdpa_oneshot_masked_kernel,
                                   inv_temp=inv_temp, use_bf16_exp=use_bf16_exp)
        in_specs.append(mask_spec)
        args.append(mflat)

    out_shapes = (
        jax.ShapeDtypeStruct((BH, Lq, Dv), q.dtype),
        jax.ShapeDtypeStruct((BH, Lq, Lk), q.dtype),   # attn in the input dtype
    )
    out_specs = (
        pl.BlockSpec((G, Lq, Dv), qkv_map),
        pl.BlockSpec((G, Lq, Lk), qkv_map),
    )

    flops = 2 * BH * Lq * Lk * (Dk + Dv)
    transcendentals = BH * Lq * Lk
    bytes_accessed = (qf.size + kf.size + vf.size) * in_isz \
        + (BH * Lq * Dv + BH * Lq * Lk) * out_isz
    if mask is not None:
        bytes_accessed += mflat.size

    out_flat, attn_flat = pl.pallas_call(
        kernel,
        out_shape=out_shapes,
        grid_spec=pltpu.PrefetchScalarGridSpec(
            num_scalar_prefetch=0,
            grid=grid,
            in_specs=in_specs,
            out_specs=out_specs,
        ),
        compiler_params=pltpu.CompilerParams(
            dimension_semantics=dims,
            vmem_limit_bytes=vmem_limit,
        ),
        cost_estimate=pl.CostEstimate(
            flops=int(flops),
            transcendentals=int(transcendentals),
            bytes_accessed=int(bytes_accessed),
        ),
    )(*args)

    return out_flat.reshape(B, H, Lq, Dv), attn_flat.reshape(B, H, Lq, Lk)


def _sdpa_flash(q, k, v, mask, temperature, use_bf16_exp, vmem_limit, group_budget,
                kv_block):
    B, H, Lq, Dk = q.shape
    Lk = k.shape[2]
    Dv = v.shape[3]
    BH = B * H
    in_isz = q.dtype.itemsize
    out_isz = q.dtype.itemsize
    inv_temp = 1.0 / float(temperature)

    qf = q.reshape(BH, Lq, Dk)
    kf = k.reshape(BH, Lk, Dk)
    vf = v.reshape(BH, Lk, Dv)

    mflat, head_shared = (None, False)
    if mask is not None:
        mflat, head_shared = _normalize_mask(mask, B, H, Lq, Lk)

    def unit_cost(g, tk):
        io_in = 2 * g * Lq * Dk * in_isz + 2 * g * tk * (Dk + Dv) * in_isz
        io_out = 2 * g * Lq * Dv * out_isz
        if mask is not None:
            io_in += 2 * (1 if head_shared else g) * Lq * tk
        scratch = g * (2 * Lq + Lq * Dv) * 4
        work = int(1.5 * g * (3 * Lq * tk + Lq * Dv) * 4)
        return io_in + io_out + scratch + work

    # Lk tile: must divide Lk; k/v blocks need tk % 8 == 0 (second-to-last dim) and the
    # mask block needs tk % 128 == 0 (last dim) unless tk == Lk.
    cap = int(kv_block) if kv_block is not None else 512
    step = 128 if mask is not None else 8
    if Lk <= cap:
        tk_cands = [Lk]
    else:
        tk_cands = sorted(
            {d for d in range(step, min(Lk, cap) + 1, step) if Lk % d == 0},
            reverse=True,
        ) or [Lk]
    tk = next((t for t in tk_cands if unit_cost(1, t) <= group_budget), tk_cands[-1])
    T = Lk // tk

    min_steps = 1 if B >= 2 else 2
    G = _pick_group(H, lambda g: unit_cost(g, tk), group_budget, min_steps)
    HG = H // G
    grid = (B, HG, T)

    def q_map(b, g, t):
        return (b * HG + g, 0, 0)

    def kv_map(b, g, t):
        return (b * HG + g, t, 0)

    in_specs = [
        pl.BlockSpec((G, Lq, Dk), q_map),
        pl.BlockSpec((G, tk, Dk), kv_map),
        pl.BlockSpec((G, tk, Dv), kv_map),
    ]
    args = [qf, kf, vf]
    if mask is None:
        kernel = functools.partial(_sdpa_flash_kernel,
                                   inv_temp=inv_temp, use_bf16_exp=use_bf16_exp)
    else:
        kernel = functools.partial(_sdpa_flash_masked_kernel,
                                   inv_temp=inv_temp, use_bf16_exp=use_bf16_exp)
        if head_shared:
            in_specs.append(pl.BlockSpec((1, Lq, tk), lambda b, g, t: (b, 0, t)))
        else:
            in_specs.append(pl.BlockSpec((G, Lq, tk),
                                         lambda b, g, t: (b * HG + g, 0, t)))
        args.append(mflat)

    flops = 2 * BH * Lq * Lk * (Dk + Dv)
    transcendentals = BH * Lq * Lk
    bytes_accessed = (qf.size + kf.size + vf.size) * in_isz + BH * Lq * Dv * out_isz
    if mask is not None:
        bytes_accessed += mflat.size

    out_flat = pl.pallas_call(
        kernel,
        out_shape=jax.ShapeDtypeStruct((BH, Lq, Dv), q.dtype),
        grid_spec=pltpu.PrefetchScalarGridSpec(
            num_scalar_prefetch=0,
            grid=grid,
            in_specs=in_specs,
            out_specs=pl.BlockSpec((G, Lq, Dv), q_map),
            scratch_shapes=[
                pltpu.VMEM((G, Lq, 1), jnp.float32),   # running max
                pltpu.VMEM((G, Lq, 1), jnp.float32),   # running denom
                pltpu.VMEM((G, Lq, Dv), jnp.float32),  # running output accumulator
            ],
        ),
        compiler_params=pltpu.CompilerParams(
            dimension_semantics=("parallel", "parallel", "arbitrary"),
            vmem_limit_bytes=vmem_limit,
        ),
        cost_estimate=pl.CostEstimate(
            flops=int(flops),
            transcendentals=int(transcendentals),
            bytes_accessed=int(bytes_accessed),
        ),
    )(*args)
    return out_flat.reshape(B, H, Lq, Dv)


def scaled_dot_product_attention(q, k, v, mask=None, *, temperature,
                                 return_attn=True, kv_block=None):
    """Pallas implementation of PyTorch ScaledDotProductAttention.forward.

    q: [B, H, Lq, Dk], k: [B, H, Lk, Dk], v: [B, H, Lk, Dv]
    mask: optional, broadcastable to [B, H, Lq, Lk]; positions with mask == 0 get -1e9.
    return_attn=True  -> (output, attn)  (module-faithful one-shot kernel)
    return_attn=False -> output only     (flash-style Lk-tiled kernel; attn never stored)
    """
    vmem_limit, group_budget = _vmem_budget()
    use_bf16_exp = _use_bf16_exp()
    if return_attn:
        return _sdpa_oneshot(q, k, v, mask, temperature, use_bf16_exp,
                             vmem_limit, group_budget)
    return _sdpa_flash(q, k, v, mask, temperature, use_bf16_exp,
                       vmem_limit, group_budget, kv_block)


# ---------------------------------------------------------------------------
# Reference + self-test
# ---------------------------------------------------------------------------

def _reference(q, k, v, mask, temperature):
    attn = jnp.matmul(q / temperature, jnp.swapaxes(k, 2, 3))
    if mask is not None:
        attn = jnp.where(mask == 0, -1e9, attn)
    attn = jax.nn.softmax(attn, axis=-1)
    out = jnp.matmul(attn, v)
    return out, attn


if __name__ == "__main__":
    key = jax.random.PRNGKey(0)
    keys = jax.random.split(key, 8)

    # Tolerances cover the bf16 exp on v6e/v7x and the approx reciprocal on the
    # flash path; on v5e everything runs in f32 and is well inside these bounds.
    TOL = dict(atol=1e-2, rtol=1e-2)

    # ---- module-faithful path: returns (out, attn) ----
    B, H, Lq, Lk, Dk, Dv = 2, 4, 8, 8, 32, 32
    temperature = float(Dk) ** 0.5
    q = jax.random.normal(keys[0], (B, H, Lq, Dk), dtype=jnp.float32)
    k = jax.random.normal(keys[1], (B, H, Lk, Dk), dtype=jnp.float32)
    v = jax.random.normal(keys[2], (B, H, Lk, Dv), dtype=jnp.float32)
    mask = (jax.random.uniform(keys[3], (B, 1, Lq, Lk)) > 0.2).astype(jnp.int32)

    out, attn = scaled_dot_product_attention(q, k, v, mask=None, temperature=temperature)
    jax.block_until_ready((out, attn))
    ref_out, ref_attn = _reference(q, k, v, None, temperature)
    assert jnp.allclose(out, ref_out, **TOL)
    assert jnp.allclose(attn, ref_attn, **TOL)

    out_m, attn_m = scaled_dot_product_attention(q, k, v, mask=mask, temperature=temperature)
    jax.block_until_ready((out_m, attn_m))
    ref_out_m, ref_attn_m = _reference(q, k, v, mask, temperature)
    assert jnp.allclose(out_m, ref_out_m, **TOL)
    assert jnp.allclose(attn_m, ref_attn_m, **TOL)

    # ---- flash (attn-free) path: larger Lk so the online-softmax tiling is exercised ----
    Lk2 = 256
    q2 = jax.random.normal(keys[4], (B, H, Lq, Dk), dtype=jnp.float32)
    k2 = jax.random.normal(keys[5], (B, H, Lk2, Dk), dtype=jnp.float32)
    v2 = jax.random.normal(keys[6], (B, H, Lk2, Dv), dtype=jnp.float32)
    mask2 = (jax.random.uniform(keys[7], (B, 1, Lq, Lk2)) > 0.2).astype(jnp.int32)

    out_f = scaled_dot_product_attention(q2, k2, v2, mask=None, temperature=temperature,
                                         return_attn=False, kv_block=128)
    jax.block_until_ready(out_f)
    ref_out_f, _ = _reference(q2, k2, v2, None, temperature)
    assert jnp.allclose(out_f, ref_out_f, **TOL)

    out_fm = scaled_dot_product_attention(q2, k2, v2, mask=mask2, temperature=temperature,
                                          return_attn=False, kv_block=128)
    jax.block_until_ready(out_fm)
    ref_out_fm, _ = _reference(q2, k2, v2, mask2, temperature)
    assert jnp.allclose(out_fm, ref_out_fm, **TOL)

    print("KERNEL_OK")
</pallas_src>

<mosaic_0001>
module attributes {stable_mosaic.version = 11 : i64} {
  func.func @_sdpa_oneshot_kernel(%arg0: i32, %arg1: memref<4x8x32xf32, #tpu.memory_space<vmem>>, %arg2: memref<4x8x32xf32, #tpu.memory_space<vmem>>, %arg3: memref<4x8x32xf32, #tpu.memory_space<vmem>>, %arg4: memref<4x8x32xf32, #tpu.memory_space<vmem>>, %arg5: memref<4x8x8xf32, #tpu.memory_space<vmem>>) attributes {dimension_semantics = [#tpu.dimension_semantics<parallel>], iteration_bounds = array<i64: 2>, scalar_prefetch = 0 : i64, scratch_operands = 0 : i64, tpu.core_type = #tpu.core_type<tc>, window_params = [{transform_indices = @transform_0, window_bounds = array<i64: 4, 8, 32>}, {transform_indices = @transform_1, window_bounds = array<i64: 4, 8, 32>}, {transform_indices = @transform_2, window_bounds = array<i64: 4, 8, 32>}, {transform_indices = @transform_3, window_bounds = array<i64: 4, 8, 32>}, {transform_indices = @transform_4, window_bounds = array<i64: 4, 8, 8>}]} {
    %c0 = arith.constant 0 : index
    %c0_0 = arith.constant 0 : index
    %c0_1 = arith.constant 0 : index
    %0 = vector.load %arg1[%c0, %c0_0, %c0_1] : memref<4x8x32xf32, #tpu.memory_space<vmem>>, vector<4x8x32xf32>
    %cst = arith.constant 0.176776692 : f32
    %1 = vector.broadcast %cst : f32 to vector<4x8x32xf32>
    %2 = arith.mulf %0, %1 : vector<4x8x32xf32>
    %c0_2 = arith.constant 0 : index
    %c0_3 = arith.constant 0 : index
    %c0_4 = arith.constant 0 : index
    %3 = vector.load %arg2[%c0_2, %c0_3, %c0_4] : memref<4x8x32xf32, #tpu.memory_space<vmem>>, vector<4x8x32xf32>
    %cst_5 = arith.constant dense<0.000000e+00> : vector<4x8x8xf32>
    %4 = tpu.matmul %2, %3, %cst_5 {dimension_numbers = #tpu.dot_dimension_numbers<[2], [2], [1], [1], [0, 0, 0, 1, 1, 1], [0], [0]>} : vector<4x8x32xf32>, vector<4x8x32xf32>, vector<4x8x8xf32> -> vector<4x8x8xf32>
    %cst_6 = arith.constant dense<0xFF800000> : vector<4x8xf32>
    %5 = vector.multi_reduction <maximumf>, %4, %cst_6 [2] : vector<4x8x8xf32> to vector<4x8xf32>
    %6 = vector.shape_cast %5 : vector<4x8xf32> to vector<4x8x1xf32>
    %7 = vector.broadcast %6 : vector<4x8x1xf32> to vector<4x8x8xf32>
    %8 = arith.subf %4, %7 : vector<4x8x8xf32>
    %9 = arith.truncf %8 : vector<4x8x8xf32> to vector<4x8x8xbf16>
    %10 = math.exp %9 : vector<4x8x8xbf16>
    %11 = arith.extf %10 : vector<4x8x8xbf16> to vector<4x8x8xf32>
    %cst_7 = arith.constant dense<0.000000e+00> : vector<4x8xf32>
    %12 = vector.multi_reduction <add>, %11, %cst_7 [2] : vector<4x8x8xf32> to vector<4x8xf32>
    %13 = vector.shape_cast %12 : vector<4x8xf32> to vector<4x8x1xf32>
    %14 = arith.extf %10 : vector<4x8x8xbf16> to vector<4x8x8xf32>
    %15 = tpu.reciprocal %13 : vector<4x8x1xf32> -> vector<4x8x1xf32>
    %16 = vector.broadcast %15 : vector<4x8x1xf32> to vector<4x8x8xf32>
    %17 = arith.mulf %14, %16 : vector<4x8x8xf32>
    %c0_8 = arith.constant 0 : index
    %c0_9 = arith.constant 0 : index
    %c0_10 = arith.constant 0 : index
    %18 = vector.load %arg3[%c0_8, %c0_9, %c0_10] : memref<4x8x32xf32, #tpu.memory_space<vmem>>, vector<4x8x32xf32>
    %cst_11 = arith.constant dense<0.000000e+00> : vector<4x8x32xf32>
    %19 = tpu.matmul %17, %18, %cst_11 {dimension_numbers = #tpu.dot_dimension_numbers<[2], [1], [1], [2], [0, 0, 0, 1, 1, 2], [0], [0]>} : vector<4x8x8xf32>, vector<4x8x32xf32>, vector<4x8x32xf32> -> vector<4x8x32xf32>
    %c0_12 = arith.constant 0 : index
    %c0_13 = arith.constant 0 : index
    %c0_14 = arith.constant 0 : index
    %20 = vector.load %arg4[%c0_12, %c0_13, %c0_14] : memref<4x8x32xf32, #tpu.memory_space<vmem>>, vector<4x8x32xf32>
    tpu.vector_store %arg4[%c0_12, %c0_13, %c0_14], %19 {strides = array<i32>} : memref<4x8x32xf32, #tpu.memory_space<vmem>>, vector<4x8x32xf32>,
    %c0_15 = arith.constant 0 : index
    %c0_16 = arith.constant 0 : index
    %c0_17 = arith.constant 0 : index
    %21 = vector.load %arg5[%c0_15, %c0_16, %c0_17] : memref<4x8x8xf32, #tpu.memory_space<vmem>>, vector<4x8x8xf32>
    tpu.vector_store %arg5[%c0_15, %c0_16, %c0_17], %17 {strides = array<i32>} : memref<4x8x8xf32, #tpu.memory_space<vmem>>, vector<4x8x8xf32>,
    return
  }
  func.func @transform_0(%arg0: i32) -> (i32, i32, i32) {
    %c0_i32 = arith.constant 0 : i32
    %c0_i32_0 = arith.constant 0 : i32
    %c0_i32_1 = arith.constant 0 : i32
    return %arg0, %c0_i32, %c0_i32_0 : i32, i32, i32
  }
  func.func @transform_1(%arg0: i32) -> (i32, i32, i32) {
    %c0_i32 = arith.constant 0 : i32
    %c0_i32_0 = arith.constant 0 : i32
    %c0_i32_1 = arith.constant 0 : i32
    return %arg0, %c0_i32, %c0_i32_0 : i32, i32, i32
  }
  func.func @transform_2(%arg0: i32) -> (i32, i32, i32) {
    %c0_i32 = arith.constant 0 : i32
    %c0_i32_0 = arith.constant 0 : i32
    %c0_i32_1 = arith.constant 0 : i32
    return %arg0, %c0_i32, %c0_i32_0 : i32, i32, i32
  }
  func.func @transform_3(%arg0: i32) -> (i32, i32, i32) {
    %c0_i32 = arith.constant 0 : i32
    %c0_i32_0 = arith.constant 0 : i32
    %c0_i32_1 = arith.constant 0 : i32
    return %arg0, %c0_i32, %c0_i32_0 : i32, i32, i32
  }
  func.func @transform_4(%arg0: i32) -> (i32, i32, i32) {
    %c0_i32 = arith.constant 0 : i32
    %c0_i32_0 = arith.constant 0 : i32
    %c0_i32_1 = arith.constant 0 : i32
    return %arg0, %c0_i32, %c0_i32_0 : i32, i32, i32
  }
}

</mosaic_0001>

<bundles_post_ra>
// kernel: tpu_custom_call.1
= control target key start
LH: loop header
LB: loop body
LE: loop exit
PB: predicated region body
PF: predicated region fallthrough
CT: control target
= control target key end

     0   :  { %s1911_s0 = inlined_call_operand.hbm [shape: f32[8,8,32], index: 0, kind: input, shape index: {}]   ;;  %s1912_s1 = inlined_call_operand.hbm [shape: f32[8,8,32], index: 1, kind: input, shape index: {}]   ;;  %s1913_s2 = inlined_call_operand.hbm [shape: f32[8,8,32], index: 2, kind: input, shape index: {}]   ;;  %s1914_s3 = inlined_call_operand.hbm [shape: f32[8,8,32], index: 3, kind: output, shape index: {0}]   ;;  %s1915_s4 = inlined_call_operand.hbm [shape: f32[8,8,8], index: 4, kind: output, shape index: {1}]  }
   0x1   :  { %1922 = sst [smem:[#allocation16_spill]] %s1911_s0 }
   0x2   :  { %1923 = sst [smem:[#allocation17_spill]] %s1912_s1 }
   0x3   :  { %10 = vsyncpa [#allocation3], 0 }
   0x4   :  { %12 = vsyncpa [#allocation3 + $0x1], 0 }
   0x5   :  { %13 = vsyncpa [#allocation6], 0 }
   0x6   :  { %15 = vsyncpa [#allocation6 + $0x1], 0 }
   0x7   :  { %16 = vsyncpa [#allocation4], 0 }
   0x8   :  { %18 = vsyncpa [#allocation4 + $0x1], 0 }
   0x9   :  { %19 = vsyncpa [#allocation10], 0 }
   0xa   :  { %21 = vsyncpa [#allocation10 + $0x1], 0  ;;  %s1572_s15 = smov 0   ;;  %s1574_s16 = smov 0  }
   0xb   :  { %s1576_s17 = smov 0   ;;  %s1578_s18 = smov 0  }
   0xc LB: > { %s1593_s19 = sadd.s32 4294967295, %s1534_s18   ;;  %s1170_s20 = sadd.s32 4294967294, %s1534_s18   ;;  %s1534_s18 = sphi %s1578_s18, %s1945_s18   ;;  %s1530_s17 = sphi %s1576_s17, %s1944_s17   ;;  %s1526_s16 = sphi %s1574_s16, %s1943_s16   ;;  %s1522_s15 = sphi %s1572_s15, %s1942_s15  }
   0xd   : > { %s1597_s21 = sadd.s32 1, %s1534_s18   ;;  %s34_s22 = sadd.s32 1, %s1530_s17 }
   0xe   : > { %s31_s23 = ssub.s32 %s1534_s18, %s1597_s21  ;;  %p41_p0 = scmp.ne.s32.totalorder %s1530_s17, %s1526_s16 }
   0xf   : > { %p32_p1 = scmp.eq.s32.totalorder %s31_s23, 0  ;;  %p42_p2 = scmp.eq.s32.totalorder %s1534_s18, 0 }
  0x10   : > { %p47_p3 = scmp.ne.s32.totalorder %s1526_s16, %s1522_s15  ;;  %p48_p4 = scmp.eq.s32.totalorder %s1593_s19, 0 }
  0x11   : > { %s1609_s24 = scalar_select %p32_p1, %s1530_s17, %s34_s22  }
  0x12   : > { %p43_p5 = por %p42_p2, %p41_p0  ;;  %p1611_p6 = por %p48_p4, %p47_p3 }
  0x13   : > { %1924 = sst [smem:[#allocation15_spill]] %s1609_s24  ;;  %p123_p7 = scmp.eq.s32.totalorder %s1593_s19, 1 }
  0x14   : > { %s1925_s25 = scalar_select %p1611_p6, 1, 0 }
  0x15   : > { %p129_p8 = scmp.eq.s32.totalorder %s1170_s20, 1  ;;  %p1296_p10 = scmp.lt.s32.totalorder %s1534_s18, 2 }
  0x16   : > { %p1618_p11 = por %p123_p7, %p41_p0  ;;  %s175_s28 = sand.u32 1, %s1530_s17  }
  0x17   : > { %p1622_p12 = por %p129_p8, %p47_p3  ;;  %s1628_s29 = sshll.u32 %s1534_s18, 9 }
  0x18   : > { %s1926_s26 = scalar_select %p1618_p11, 1, 0 }
  0x19   : > { %s1927_s27 = scalar_select %p1622_p12, 1, 0 }
  0x1a   : > { %s1632_s30 = sshll.u32 %s175_s28, 5  ;;  %p1634_p13 = pnand %p1296_p10, %p43_p5 }
  0x1b   : > { %s196_s6 = sand.u32 1, %s1534_s18   ;;  %s1929_s1 = sld [smem:[#allocation17_spill]] }
  0x1c   : > { %s200_s10 = scalar_lea.vmem [#allocation5], %s1632_s30  ;;  %s1649_s12 = scalar_lea.sflag [#allocation6], %s196_s6 }
  0x1d   : > { %s207_s11 = sshll.u32 %s200_s10, 4  ;;  %p1655_p2 = pneg %p1634_p13  ;;  %s1646_s11 = int_to_ptr.vmem [resolvable:$true] %s207_s11 }
  0x21   : > { %s1643_s9 = scalar_lea.hbm %s1929_s1, %s1628_s29  ;;  %s1357_s23 = scalar_lea.hbm %s1929_s1, 1024 }
  0x22   : > { %s1352_s13 = scalar_lea.hbm %s1643_s9, 512  ;;  %p1358_p5 = scmp.lt.s32.totalorder %s1643_s9, %s1929_s1 }
  0x23   : > { %p1353_p1 = scmp.ne.s32.totalorder %s1643_s9, %s1352_s13  ;;  %p1359_p7 = scmp.lt.s32.totalorder %s1357_s23, %s1352_s13 }
  0x25   : > { %p1355_p3 = pnand %p1655_p2, %p1353_p1  ;;  %p1360_p8 = por %p1359_p7, %p1358_p5 }
  0x27   : > { %p1356_p4 = pneg %p1355_p3 }
  0x29   : > { %p1361_p10 = pnand %p1360_p8, %p1356_p4 }
  0x2b   : > { %1364 = shalt.err (!%p1361_p10)
}
  0x2c   : > { %s1365_s6 = scalar_lea.vmem %s1646_s11, 512  ;;  %s1536_s10 = smov [#allocation5]  }
  0x2d   : > { %p1366_p9 = scmp.ne.s32.totalorder %s1646_s11, %s1365_s6  ;;  %s1370_s20 = sshll.u32 %s1536_s10, 4  ;;  %s1371_s20 = int_to_ptr.vmem [resolvable:$false] %s1370_s20 }
  0x2e   : > { %s1372_s22 = scalar_lea.vmem %s1371_s20, 1024  ;;  %p1373_p0 = scmp.lt.s32.totalorder %s1646_s11, %s1371_s20 }
  0x2f   : > { %p1368_p1 = pnand %p1366_p9, %p1655_p2  ;;  %p1374_p12 = scmp.lt.s32.totalorder %s1372_s22, %s1365_s6 }
  0x31   : > { %p1369_p3 = pneg %p1368_p1  ;;  %p1375_p11 = por %p1374_p12, %p1373_p0 }
  0x33   : > { %p1376_p6 = pnand %p1375_p11, %p1369_p3 }
  0x35   : > { %1379 = shalt.err (!%p1376_p6)
}
  0x36   : > { %s1918_s13 = smov 128   ;;  %s1920_s23 = smov 8  }
  0x37   : > { %1285 = dma.hbm_to_vmem [thread:$0]  (!%p1634_p13), %s1643_s9, 512, %s1646_s11, %s1649_s12, %s1918_s13, %s1918_s13, %s1920_s23  }
  0x38   : > { %p236_p9 = scmp.lt.s32.totalorder %s1534_s18, 3  ;;  %s1931_s0 = sld [smem:[#allocation16_spill]] }
  0x39   : > { %p1932_p6 = scmp.ge.s32.totalorder %s1534_s18, 1  ;;  %s179_s20 = scalar_lea.vmem [#allocation2], %s1632_s30 }
  0x3a   : > { %s186_s22 = sshll.u32 %s179_s20, 4  ;;  %s176_s9 = scalar_lea.sflag [#allocation3], %s175_s28  ;;  %s1695_s22 = int_to_ptr.vmem [resolvable:$true] %s186_s22 }
  0x3b   : > { %p1690_p11 = pnand %p1932_p6, %p236_p9 }
  0x3d   : > { %s1933_s10 = scalar_select %p1690_p11, 1, 0 }
  0x3e   : > { %s1686_s6 = scalar_lea.hbm %s1931_s0, %s1628_s29  ;;  %s1385_s13 = scalar_lea.hbm %s1931_s0, 1024 }
  0x3f   : > { %s1380_s11 = scalar_lea.hbm %s1686_s6, 512  ;;  %p1386_p5 = scmp.lt.s32.totalorder %s1686_s6, %s1931_s0 }
  0x40   : > { %p1381_p12 = scmp.ne.s32.totalorder %s1686_s6, %s1380_s11  ;;  %p1387_p7 = scmp.lt.s32.totalorder %s1385_s13, %s1380_s11 }
  0x42   : > { %p1383_p0 = pnand %p1381_p12, %p1655_p2  ;;  %p1388_p8 = por %p1387_p7, %p1386_p5 }
  0x44   : > { %p1384_p4 = pneg %p1383_p0 }
  0x46   : > { %p1389_p10 = pnand %p1388_p8, %p1384_p4 }
  0x48   : > { %1392 = shalt.err (!%p1389_p10)
}
  0x49   : > { %s1393_s28 = scalar_lea.vmem %s1695_s22, 512  ;;  %s1539_s20 = smov [#allocation2]  }
  0x4a   : > { %p1394_p1 = scmp.ne.s32.totalorder %s1695_s22, %s1393_s28  ;;  %s1398_s7 = sshll.u32 %s1539_s20, 4  ;;  %s1399_s7 = int_to_ptr.vmem [resolvable:$false] %s1398_s7 }
  0x4b   : > { %s1400_s8 = scalar_lea.vmem %s1399_s7, 1024  ;;  %p1401_p6 = scmp.lt.s32.totalorder %s1695_s22, %s1399_s7 }
  0x4c   : > { %p1396_p3 = pnand %p1394_p1, %p1655_p2  ;;  %p1402_p12 = scmp.lt.s32.totalorder %s1400_s8, %s1393_s28 }
  0x4e   : > { %p1397_p9 = pneg %p1396_p3  ;;  %p1403_p0 = por %p1402_p12, %p1401_p6 }
  0x50   : > { %p1404_p11 = pnand %p1403_p0, %p1397_p9 }
  0x52   : > { %1407 = shalt.err (!%p1404_p11)
}
  0x53   : > { %s1934_s1 = smov 8   ;;  %s1935_s13 = smov 128  }
  0x54   : > { %1282 = dma.hbm_to_vmem [thread:$0]  (!%p1634_p13), %s1686_s6, 512, %s1695_s22, %s176_s9, %s1935_s13, %s1935_s13, %s1934_s1  }
  0x55   : > { %s1726_s20 = scalar_lea.hbm %s1913_s2, %s1628_s29  ;;  %s221_s28 = scalar_lea.vmem [#allocation7], %s1632_s30 }
  0x56   : > { %s228_s7 = sshll.u32 %s221_s28, 4  ;;  %s1408_s8 = scalar_lea.hbm %s1726_s20, 512  ;;  %s229_s7 = int_to_ptr.vmem [resolvable:$true] %s228_s7 }
  0x57   : > { %p1409_p11 = scmp.ne.s32.totalorder %s1726_s20, %s1408_s8  ;;  %s1413_s6 = scalar_lea.hbm %s1913_s2, 1024 }
  0x58   : > { %p1414_p7 = scmp.lt.s32.totalorder %s1726_s20, %s1913_s2  ;;  %p1415_p8 = scmp.lt.s32.totalorder %s1413_s6, %s1408_s8 }
  0x59   : > { %p1411_p4 = pnand %p1409_p11, %p1655_p2 }
  0x5a   : > { %p1416_p10 = por %p1415_p8, %p1414_p7 }
  0x5b   : > { %p1412_p5 = pneg %p1411_p4 }
  0x5d   : > { %p1417_p1 = pnand %p1416_p10, %p1412_p5 }
  0x5f   : > { %1420 = shalt.err (!%p1417_p1)
}
  0x60   : > { %s1421_s29 = scalar_lea.vmem %s229_s7, 512  ;;  %s1540_s30 = smov [#allocation7]  }
  0x61   : > { %p1422_p3 = scmp.ne.s32.totalorder %s229_s7, %s1421_s29  ;;  %s1426_s23 = sshll.u32 %s1540_s30, 4  ;;  %s1427_s23 = int_to_ptr.vmem [resolvable:$false] %s1426_s23 }
  0x62   : > { %s1428_s11 = scalar_lea.vmem %s1427_s23, 1024  ;;  %p1429_p12 = scmp.lt.s32.totalorder %s229_s7, %s1427_s23 }
  0x63   : > { %p1424_p9 = pnand %p1422_p3, %p1655_p2  ;;  %p1430_p0 = scmp.lt.s32.totalorder %s1428_s11, %s1421_s29 }
  0x65   : > { %p1425_p6 = pneg %p1424_p9  ;;  %p1431_p11 = por %p1430_p0, %p1429_p12 }
  0x67   : > { %p1432_p4 = pnand %p1431_p11, %p1425_p6 }
  0x69   : > { %1435 = shalt.err (!%p1432_p4)
}
  0x6a   : > { %1288 = dma.hbm_to_vmem [thread:$0]  (!%p1634_p13), %s1726_s20, 512, %s229_s7, %s1649_s12, %s1935_s13, %s1935_s13, %s1934_s1  }
  0x6b   : > { %p1936_p2 = scmp.ne.s32.totalorder %s1933_s10, 0 }
  0x6c   : > { %s1752_s0 = sand.u32 (!%p1936_p2), 1, %s1526_s16   ;;  %p1937_p5 = scmp.ne.s32.totalorder (!%p1936_p2), %s1925_s25, 0 }
  0x6d   : > { %240 = sbr.rel (%p1936_p2) target bundleno = 849 (0x351), region = 32  ;;  %s1755_s24 = sshll.u32 (!%p1936_p2), %s1752_s0, 5 }
  0x6e   : > { %s243_s14 = scalar_lea.sflag (!%p1936_p2), [#allocation3], %s1752_s0  ;;  %s246_s5 = scalar_lea.vmem (!%p1936_p2), [#allocation2], %s1755_s24 }
  0x72   : > { %1505 = dma.done.wait (%p1937_p5), %s243_s14, 512  }
  0x73   : > { %1507 = vsyncadd (%p1937_p5), %s243_s14, 4294966784  ;;  %s251_s12 = sand.u32 1, %s1593_s19   ;;  %s255_s1 = scalar_lea.vmem [#allocation5], %s1755_s24 }
  0x74   : > { %s252_s10 = scalar_lea.sflag [#allocation6], %s251_s12 }
  0x75   : > { %1509 = dma.done.wait (%p1937_p5), %s252_s10, 1024  }
  0x76   : > { %1511 = vsyncadd (%p1937_p5), %s252_s10, 4294966272  ;;  %v1541_v0 = vmov 0.0   ;;  %vm1542_vm0 = vmmov 0   ;;  %vm321_vm1 = vcmask 261120   ;;  %v317_v1 = vld [vmem:[%s255_s1] sm:$0xff]  ;;  %v318_v3 = vld [vmem:[%s255_s1 + $0x8] sm:$0xff] }
  0x77   : > { %1229 = vmatprep.subr.mxu0 %v1541_v0  ;;  %1231 = vmatprep.mubr.msk.f32.mxu0 %vm1542_vm0, %v1541_v0  ;;  %v309_v2 = vld [vmem:[%s246_s5] sm:$0xff]  ;;  %v310_v5 = vld [vmem:[%s246_s5 + $0x8] sm:$0xff]  ;;  %v311_v6 = vld [vmem:[%s246_s5 + $0x10] sm:$0xff]  ;;  %vm626_vm2 = vcmask 64512   ;;  %s264_s25 = scalar_lea.vmem [#allocation7], %s1755_s24  ;;  %s303_s13 = scalar_lea.vmem [#allocation9], %s1755_s24 }
  0x78   : > { %1234 = vmatprep.subr.mxu1 %v1541_v0  ;;  %1236 = vmatprep.mubr.msk.f32.mxu1 %vm1542_vm0, %v1541_v0  ;;  %v313_v4 = vmul.f32 0.17677669, %v309_v2  ;;  %v319_v7 = vld [vmem:[%s255_s1 + $0x10] sm:$0xff]  ;;  %v314_v8 = vmul.f32 0.17677669, %v310_v5  ;;  %v312_v9 = vld [vmem:[%s246_s5 + $0x18] sm:$0xff] }
  0x79   : > { %1230 = vmatpush3.xpose.msk.msra.mxu0 %vm321_vm1, %v317_v1  ;;  %1235 = vmatpush3.xpose.msk.msra.mxu1 %vm321_vm1, %v318_v3  ;;  %v320_v10 = vld [vmem:[%s255_s1 + $0x18] sm:$0xff]  ;;  %v315_v11 = vmul.f32 0.17677669, %v311_v6  ;;  %v316_v12 = vmul.f32 0.17677669, %v312_v9  ;;  %v683_v53 = vld [vmem:[%s264_s25] sm:$0xff] }
  0x7a   : > { %1239 = vmatprep.subr.mxu0 %v1541_v0  ;;  %1244 = vmatprep.subr.mxu1 %v1541_v0  ;;  %v684_v54 = vld [vmem:[%s264_s25 + $0x8] sm:$0xff]  ;;  %v685_v61 = vld [vmem:[%s264_s25 + $0x10] sm:$0xff]  ;;  %v686_v2 = vld [vmem:[%s264_s25 + $0x18] sm:$0xff]  ;;  %s1211_s20 = sshll.u32 %s1593_s19, 9  ;;  %s1022_s28 = sshll.u32 %s303_s13, 4  ;;  %s1827_s28 = int_to_ptr.vmem [resolvable:$true] %s1022_s28 }
  0x7b   : > { %s1825_s6 = scalar_lea.hbm %s1915_s4, %s1211_s20  ;;  %s993_s22 = scalar_lea.sflag [#allocation10], %s1752_s0 }
  0x7c   : > { %1232 = vmatmul.mubr.msk.f32.vlgmr.msra.gmra.mxu0 %vm321_vm1, %v313_v4  ;;  %1237 = vmatmul.mubr.msk.f32.vlgmr.msra.gmra.mxu1 %vm321_vm1, %v314_v8  ;;  %s1436_s9 = scalar_lea.vmem %s1827_s28, 512  ;;  %p1938_p7 = scmp.ne.s32.totalorder %s1926_s26, 0 }
  0x7d   : > { %1240 = vmatpush3.xpose.msk.msra.mxu0 %vm321_vm1, %v319_v7  ;;  %1241 = vmatprep.mubr.msk.f32.mxu0 %vm1542_vm0, %v1541_v0  ;;  %p1437_p13 = scmp.ne.s32.totalorder %s1827_s28, %s1436_s9  ;;  %s1543_s29 = smov [#allocation9]  }
  0x7e   : > { %1245 = vmatpush3.xpose.msk.msra.mxu1 %vm321_vm1, %v320_v10  ;;  %1246 = vmatprep.mubr.msk.f32.mxu1 %vm1542_vm0, %v1541_v0  ;;  %s1440_s30 = sshll.u32 %s1543_s29, 4  ;;  %s1441_s30 = int_to_ptr.vmem [resolvable:$false] %s1440_s30 }
  0x7f   : > { %1249 = vmatprep.subr.mxu0 %v1541_v0  ;;  %1254 = vmatprep.subr.mxu1 %v1541_v0  ;;  %p1438_p8 = pnand %p1437_p13, %p1938_p7  ;;  %s1442_s23 = scalar_lea.vmem %s1441_s30, 1024 }
  0x80   : > { %1242 = vmatmul.mubr.msk.f32.vlgmr.msra.gmra.mxu0 %vm321_vm1, %v315_v11  ;;  %p1443_p1 = scmp.lt.s32.totalorder %s1827_s28, %s1441_s30  ;;  %p1444_p3 = scmp.lt.s32.totalorder %s1442_s23, %s1436_s9 }
  0x81   : > { %1247 = vmatmul.mubr.msk.f32.vlgmr.msra.gmra.mxu1 %vm321_vm1, %v316_v12  ;;  %1251 = vmatprep.mubr.msk.f32.mxu0 %vm1542_vm0, %v1541_v0  ;;  %p1439_p10 = pneg %p1438_p8 }
  0x82   : > { %1256 = vmatprep.mubr.msk.f32.mxu1 %vm1542_vm0, %v1541_v0  ;;  %1250 = vmatpush3.msra.mxu0 %v683_v53  ;;  %p1445_p9 = por %p1444_p3, %p1443_p1 }
  0x83   : > { %1259 = vmatprep.subr.mxu0 %v1541_v0  ;;  %1255 = vmatpush3.msra.mxu1 %v684_v54 }
  0x84   : > { %1264 = vmatprep.subr.mxu1 %v1541_v0  ;;  %p1446_p6 = pnand %p1445_p9, %p1439_p10 }
 0x13c   : > { %v394_v13 = vpop.f32.mrf.mxu0  ;;  %v470_v14 = vpop.f32.mrf.mxu1 }
 0x13d   : > { %v627_v15 = vsel %vm626_vm2, %v394_v13, -inf  ;;  %v630_v18 = vsel %vm626_vm2, %v470_v14, -inf }
 0x13e   : > { %628 = vmax.xlane.f32.xlu0 %v627_v15  ;;  %v1233_v16 = vpop.f32.mrf.mxu0  ;;  %v1238_v17 = vpop.f32.mrf.mxu1 }
 0x140   : > { %v546_v19 = vpop.f32.mrf.mxu0 }
 0x141   : > { %v633_v20 = vsel %vm626_vm2, %v546_v19, -inf  ;;  %v622_v21 = vpop.f32.mrf.mxu1 }
 0x142   : > { %631 = vmax.xlane.f32.xlu0 %v630_v18  ;;  %634 = vmax.xlane.f32.xlu1 %v633_v20  ;;  %v1243_v22 = vpop.f32.mrf.mxu0  ;;  %v636_v24 = vsel %vm626_vm2, %v622_v21, -inf }
 0x143   : > { %v1248_v23 = vpop.f32.mrf.mxu1 }
 0x146   : > { %637 = vmax.xlane.f32.xlu1 %v636_v24 }
 0x1c7   : > { %v629_v25 = vpop.xlane.xlu0 %628 }
 0x1c8   : > { %v639_v26 = vsub.f32 %v394_v13, %v629_v25 }
 0x1ca   : > { %v643_v27 = vpack.c.bf16 %v639_v26, %v639_v26 }
 0x1cb   : > { %v632_v28 = vpop.xlane.xlu0 %631  ;;  %v635_v29 = vpop.xlane.xlu1 %634 }
 0x1cc   : > { %v648_v30 = vmul.bf16 1069105081, %v643_v27  ;;  %v640_v31 = vsub.f32 %v470_v14, %v632_v28  ;;  %v641_v32 = vsub.f32 %v546_v19, %v635_v29 }
 0x1ce   : > { %1336 = vpow.bf16 %v648_v30  ;;  %v644_v33 = vpack.c.bf16 %v640_v31, %v640_v31  ;;  %v645_v34 = vpack.c.bf16 %v641_v32, %v641_v32 }
 0x1cf   : > { %v638_v35 = vpop.xlane.xlu1 %637 }
 0x1d0   : > { %v651_v36 = vmul.bf16 1069105081, %v644_v33  ;;  %v654_v37 = vmul.bf16 1069105081, %v645_v34  ;;  %v642_v38 = vsub.f32 %v622_v21, %v638_v35 }
 0x1d2   : > { %1338 = vpow.bf16 %v651_v36  ;;  %v646_v39 = vpack.c.bf16 %v642_v38, %v642_v38 }
 0x1d3   : > { %1340 = vpow.bf16 %v654_v37 }
 0x1d4   : > { %v657_v40 = vmul.bf16 1069105081, %v646_v39 }
 0x1d6   : > { %1342 = vpow.bf16 %v657_v40 }
 0x1dc   : > { %v1337_v41 = vpop.eup %1336 }
 0x1dd   : > { %v659_v42 = vunpack.c.l.bf16 %v1337_v41 }
 0x1df   : > { %v663_v43 = vsel %vm626_vm2, %v659_v42, 0.0 }
 0x1e0   : > { %v1339_v44 = vpop.eup %1338  ;;  %664 = vadd.xlane.f32.xlu0 %v663_v43 }
 0x1e1   : > { %v1341_v45 = vpop.eup %1340  ;;  %v660_v46 = vunpack.c.l.bf16 %v1339_v44 }
 0x1e2   : > { %v661_v47 = vunpack.c.l.bf16 %v1341_v45 }
 0x1e3   : > { %v666_v48 = vsel %vm626_vm2, %v660_v46, 0.0 }
 0x1e4   : > { %v1343_v49 = vpop.eup %1342  ;;  %667 = vadd.xlane.f32.xlu1 %v666_v48  ;;  %v669_v50 = vsel %vm626_vm2, %v661_v47, 0.0 }
 0x1e5   : > { %670 = vadd.xlane.f32.xlu0 %v669_v50  ;;  %v662_v51 = vunpack.c.l.bf16 %v1343_v49 }
 0x1e7   : > { %v672_v52 = vsel %vm626_vm2, %v662_v51, 0.0 }
 0x1e8   : > { %673 = vadd.xlane.f32.xlu1 %v672_v52 }
 0x269   : > { %v665_v55 = vpop.xlane.xlu0 %664 }
 0x26a   : > { %1344 = vrcp.f32 %v665_v55 }
 0x26d   : > { %v668_v56 = vpop.xlane.xlu1 %667 }
 0x26e   : > { %v671_v57 = vpop.xlane.xlu0 %670  ;;  %1346 = vrcp.f32 %v668_v56 }
 0x26f   : > { %1348 = vrcp.f32 %v671_v57 }
 0x271   : > { %v674_v58 = vpop.xlane.xlu1 %673 }
 0x272   : > { %1350 = vrcp.f32 %v674_v58 }
 0x277   : > { %v1345_v59 = vpop.eup %1344 }
 0x278   : > { %v679_v60 = vmul.f32 %v1345_v59, %v659_v42 }
 0x27a   : > { %1252 = vmatmul.mubr.msk.f32.vlgmr.msra.gmra.mxu0 %vm626_vm2, %v679_v60  ;;  %983 = vst.msk [vmem:[%s303_s13] sm:$0xff] %vm626_vm2, %v679_v60 }
 0x27b   : > { %v1347_v62 = vpop.eup %1346  ;;  %1260 = vmatpush3.msra.mxu0 %v685_v61  ;;  %1261 = vmatprep.mubr.msk.f32.mxu0 %vm1542_vm0, %v1541_v0 }
 0x27c   : > { %v1349_v63 = vpop.eup %1348  ;;  %v680_v1 = vmul.f32 %v1347_v62, %v660_v46 }
 0x27d   : > { %v681_v3 = vmul.f32 %v1349_v63, %v661_v47 }
 0x27e   : > { %1257 = vmatmul.mubr.msk.f32.vlgmr.msra.gmra.mxu1 %vm626_vm2, %v680_v1  ;;  %984 = vst.msk [vmem:[%s303_s13 + $0x8] sm:$0xff] %vm626_vm2, %v680_v1 }
 0x27f   : > { %v1351_v4 = vpop.eup %1350  ;;  %1262 = vmatmul.mubr.msk.f32.vlgmr.msra.gmra.mxu0 %vm626_vm2, %v681_v3  ;;  %985 = vst.msk [vmem:[%s303_s13 + $0x10] sm:$0xff] %vm626_vm2, %v681_v3  ;;  %1265 = vmatpush3.msra.mxu1 %v686_v2 }
 0x280   : > { %1266 = vmatprep.mubr.msk.f32.mxu1 %vm1542_vm0, %v1541_v0  ;;  %v682_v5 = vmul.f32 %v1351_v4, %v662_v51 }
 0x282   : > { %1267 = vmatmul.mubr.msk.f32.vlgmr.msra.gmra.mxu1 %vm626_vm2, %v682_v5  ;;  %986 = vst.msk [vmem:[%s303_s13 + $0x18] sm:$0xff] %vm626_vm2, %v682_v5 }
 0x283   : > { %1449 = shalt.err (!%p1446_p6)
}
 0x284   : > { %s1450_s11 = scalar_lea.hbm %s1825_s6, 512  ;;  %s1454_s12 = scalar_lea.hbm %s1915_s4, 1024 }
 0x285   : > { %p1451_p12 = scmp.ne.s32.totalorder %s1825_s6, %s1450_s11  ;;  %p1455_p4 = scmp.lt.s32.totalorder %s1825_s6, %s1915_s4 }
 0x286   : > { %p1456_p2 = scmp.lt.s32.totalorder %s1454_s12, %s1450_s11 }
 0x287   : > { %p1452_p0 = pnand %p1451_p12, %p1938_p7 }
 0x288   : > { %p1457_p5 = por %p1456_p2, %p1455_p4 }
 0x289   : > { %p1453_p11 = pneg %p1452_p0 }
 0x28b   : > { %p1458_p13 = pnand %p1457_p5, %p1453_p11 }
 0x28d   : > { %1461 = shalt.err (!%p1458_p13)
}
 0x28e   : > { %s1544_s25 = smov 128   ;;  %s1545_s13 = smov 8  }
 0x28f   : > { %1276 = dma.vmem_to_hbm [thread:$0]  (%p1938_p7), %s1827_s28, 512, %s1825_s6, %s993_s22, %s1544_s25, %s1544_s25, %s1545_s13  }
 0x290   : > { %s296_s7 = scalar_lea.vmem [#allocation8], %s1755_s24  ;;  %s1866_s6 = scalar_lea.hbm %s1914_s3, %s1211_s20 }
 0x291   : > { %s1006_s8 = sshll.u32 %s296_s7, 4  ;;  %s988_s22 = scalar_lea.sflag [#allocation4], %s1752_s0  ;;  %s1858_s8 = int_to_ptr.vmem [resolvable:$true] %s1006_s8 }
 0x292   : > { %s1462_s9 = scalar_lea.vmem %s1858_s8, 512  ;;  %s1546_s29 = smov [#allocation8]  }
 0x293   : > { %p1463_p8 = scmp.ne.s32.totalorder %s1858_s8, %s1462_s9  ;;  %s1466_s30 = sshll.u32 %s1546_s29, 4  ;;  %s1467_s30 = int_to_ptr.vmem [resolvable:$false] %s1466_s30 }
 0x294   : > { %s1468_s23 = scalar_lea.vmem %s1467_s30, 1024  ;;  %p1469_p3 = scmp.lt.s32.totalorder %s1858_s8, %s1467_s30 }
 0x295   : > { %p1464_p10 = pnand %p1463_p8, %p1938_p7  ;;  %p1470_p9 = scmp.lt.s32.totalorder %s1468_s23, %s1462_s9 }
 0x297   : > { %p1465_p1 = pneg %p1464_p10  ;;  %p1471_p6 = por %p1470_p9, %p1469_p3 }
 0x299   : > { %p1472_p12 = pnand %p1471_p6, %p1465_p1 }
 0x33a   : > { %v756_v0 = vpop.f32.mrf.mxu0 }
 0x33b   : > { %979 = vst.msk [vmem:[%s296_s7] sm:$0xff] %vm321_vm1, %v756_v0 }
 0x33c   : > { %v1253_v6 = vpop.f32.mrf.mxu0 }
 0x33e   : > { %v829_v7 = vpop.f32.mrf.mxu1 }
 0x33f   : > { %980 = vst.msk [vmem:[%s296_s7 + $0x8] sm:$0xff] %vm321_vm1, %v829_v7  ;;  %v902_v8 = vpop.f32.mrf.mxu0 }
 0x340   : > { %981 = vst.msk [vmem:[%s296_s7 + $0x10] sm:$0xff] %vm321_vm1, %v902_v8  ;;  %v1258_v9 = vpop.f32.mrf.mxu1 }
 0x341   : > { %v1263_v10 = vpop.f32.mrf.mxu0 }
 0x342   : > { %v975_v11 = vpop.f32.mrf.mxu1 }
 0x343   : > { %982 = vst.msk [vmem:[%s296_s7 + $0x18] sm:$0xff] %vm321_vm1, %v975_v11 }
 0x344   : > { %v1268_v12 = vpop.f32.mrf.mxu1 }
 0x345   : > { %1475 = shalt.err (!%p1472_p12)
}
 0x346   : > { %s1476_s19 = scalar_lea.hbm %s1866_s6, 512  ;;  %s1480_s11 = scalar_lea.hbm %s1914_s3, 1024 }
 0x347   : > { %p1477_p0 = scmp.ne.s32.totalorder %s1866_s6, %s1476_s19  ;;  %p1481_p2 = scmp.lt.s32.totalorder %s1866_s6, %s1914_s3 }
 0x348   : > { %p1482_p5 = scmp.lt.s32.totalorder %s1480_s11, %s1476_s19 }
 0x349   : > { %p1478_p11 = pnand %p1477_p0, %p1938_p7 }
 0x34a   : > { %p1483_p13 = por %p1482_p5, %p1481_p2 }
 0x34b   : > { %p1479_p4 = pneg %p1478_p11 }
 0x34d   : > { %p1484_p8 = pnand %p1483_p13, %p1479_p4 }
 0x34f   : > { %1487 = shalt.err (!%p1484_p8)
}
 0x350   : > { %1275 = dma.vmem_to_hbm [thread:$0]  (%p1938_p7), %s1858_s8, 512, %s1866_s6, %s988_s22, %s1544_s25, %s1544_s25, %s1545_s13  }
 0x351 PF: > { %s1037_s12 = sand.u32 1, %s1522_s15   ;;  %p1939_p10 = scmp.ne.s32.totalorder %s1927_s27, 0 }
 0x352   : > { %p1940_p1 = scmp.ge.s32.totalorder %s1534_s18, 2  ;;  %s1038_s10 = scalar_lea.sflag [#allocation4], %s1037_s12 }
 0x354   : > { %p1290_p3 = pnand %p1940_p1, %p1939_p10 }
 0x356   : > { %p1291_p9 = pneg %p1290_p3 }
 0x358   : > { %1513 = dma.done.wait (%p1291_p9), %s1038_s10, 512  }
 0x359   : > { %1515 = vsyncadd (%p1291_p9), %s1038_s10, 4294966784  ;;  %s1047_s1 = scalar_lea.sflag [#allocation10], %s1037_s12 }
 0x35a   : > { %1517 = dma.done.wait (%p1291_p9), %s1047_s1, 512  }
 0x35b   : > { %1519 = vsyncadd (%p1291_p9), %s1047_s1, 4294966784  ;;  %s1941_s26 = sld [smem:[#allocation15_spill]]  ;;  %p24_p7 = scmp.ge.s32.totalorder %s1597_s21, 4  }
 0x35c   : > { %s1942_s15 = smov %s1526_s16  ;;  %s1943_s16 = smov %s1530_s17 }
 0x35d   : > { %s1945_s18 = smov %s1597_s21  ;;  %26 = sbr.rel (!%p24_p7) target bundleno = 12 (0xc), region = 118 }
 0x361   : > { %s1944_s17 = smov %s1941_s26 }
 0x362   :  { %1052 = vsyncpa [#allocation3], 1 }
 0x363   :  { %1054 = vsyncpa [#allocation3 + $0x1], 1 }
 0x364   :  { %1055 = vsyncpa [#allocation6], 1 }
 0x365   :  { %1057 = vsyncpa [#allocation6 + $0x1], 1 }
 0x366   :  { %1058 = vsyncpa [#allocation4], 1 }
 0x367   :  { %1060 = vsyncpa [#allocation4 + $0x1], 1 }
 0x368   :  { %1061 = vsyncpa [#allocation10], 1 }
 0x369   :  { %1063 = vsyncpa [#allocation10 + $0x1], 1 }

</bundles_post_ra>
